<compile_context>
chip_gen: v6e
topology: v6e:2x2x1
jax: 0.10.0
libtpu: 0.0.40
codegen_flags: <defaults>
</compile_context>

<pallas_src>
import math
import jax
import jax.numpy as jnp
from jax import lax
from jax.experimental import pallas as pl
from jax.experimental.pallas import tpu as pltpu


# --------------------------------------------------------------------------
# Kernel 1: fused multi-head graph attention + aggregation (pre-BatchNorm),
# plus per-row-tile BatchNorm partial statistics in the epilogue.
# Grid axis 0 = target-row tiles ("parallel" -> megacore).
# --------------------------------------------------------------------------
def gnn_attn_kernel(adj_ref, ai_ref, ajT_ref, xh_ref, bias_ref,
                    pre_ref, stats_ref):
    tr, cp = pre_ref.shape                 # row tile, padded out channels
    n_heads = ai_ref.shape[1]

    edge = adj_ref[...] != 0               # (TR, N) int8 -> bool; adj[i,j]=1 iff j->i
    a_i = ai_ref[...]                      # (TR, H) f32  target-side logits (precomputed)
    a_j = ajT_ref[...]                     # (H, N)  f32  source-side logits (precomputed)

    agg = jnp.zeros((tr, cp), jnp.float32)
    for h in range(n_heads):               # small static head count -> unrolled
        logits = a_i[:, h:h + 1] + a_j[h:h + 1, :]                   # (TR, N)
        logits = jnp.where(logits > 0, logits, 0.2 * logits)         # LeakyReLU(0.2)
        logits = jnp.where(edge, logits, -1e30)                      # mask non-edges
        # NOTE: every row is guaranteed >= 1 edge (self-loops added upstream).
        m = jnp.max(logits, axis=1, keepdims=True)
        p = jnp.exp(logits - m)                                      # masked -> exact 0
        denom = jnp.maximum(jnp.sum(p, axis=1, keepdims=True), 1e-30)
        # Deferred softmax normalization: matmul the unnormalized probabilities
        # (bf16) and rescale the (TR, Cp) result instead of the (TR, N) probs.
        agg = agg + (jnp.dot(p.astype(jnp.bfloat16),
                             xh_ref[:, h * cp:(h + 1) * cp],         # (N, Cp) bf16
                             preferred_element_type=jnp.float32)
                     * pl.reciprocal(denom, approx=True))

    pre = agg * (1.0 / n_heads) + bias_ref[...]                      # head mean + bias
    pre_ref[...] = pre

    # Per-row-tile BatchNorm partial statistics (finalized in the wrapper).
    s1 = jnp.sum(pre, axis=0, keepdims=True)                         # (1, Cp)
    s2 = jnp.sum(pre * pre, axis=0, keepdims=True)                   # (1, Cp)
    stats_ref[...] = jnp.concatenate([s1, s2], axis=0)[None]         # (1, 2, Cp)


# --------------------------------------------------------------------------
# Kernel 2: apply BatchNorm1d (precomputed per-channel scale/shift) + ReLU,
# row-tiled and pipelined ("parallel" grid).
# --------------------------------------------------------------------------
def bn_relu_kernel(pre_ref, scale_ref, shift_ref, out_ref):
    out_ref[...] = jnp.maximum(pre_ref[...] * scale_ref[...] + shift_ref[...], 0.0)


# --------------------------------------------------------------------------
# Tiling / VMEM heuristics (generation-aware).
# --------------------------------------------------------------------------
def _vmem_limit_bytes():
    # ~75% of physical VMEM, capped, leaving headroom for Pallas pipeline
    # buffers / internal scratch (v7x: ~48 MiB; v5e/v6e: ~96 MiB).
    try:
        cap = int(pltpu.get_tpu_info().vmem_capacity_bytes)
    except Exception:
        cap = 128 * 1024 * 1024
    return min((cap * 3) // 4, 100 * 1024 * 1024)


def _attn_vmem_bytes(row_tile, n, h, cp):
    # Rough per-call VMEM residency (pipelined operands double-buffered).
    return (2 * row_tile * n * 1            # adjacency row tile (int8)
            + 2 * row_tile * h * 4          # a_i row tile
            + 2 * h * n * 4                 # a_j (all sources)
            + 2 * n * h * cp * 2            # xh_all (bf16)
            + 2 * row_tile * cp * 4         # pre output tile
            + 2 * 2 * cp * 4 + 2 * cp * 4)  # stats + bias


def _pick_row_tile(n, h, cp, vmem_limit):
    if n % 128 != 0:
        # TODO(synk): pad the target-row axis for large N not divisible by 128.
        return n
    if n % 256 == 0 and _attn_vmem_bytes(256, n, h, cp) <= (vmem_limit * 3) // 5:
        return 256                          # v6e/v7x MXU-optimal when it fits
    return 128


# --------------------------------------------------------------------------
# Wrapper: parameter folding / padding, one-time precompute, two pallas_calls.
# --------------------------------------------------------------------------
def gnn_layer_forward(x, adj, emb, w_heads, att_i, att_j, att_em_i, att_em_j,
                      bias, gamma, beta, *, row_tile=None):
    N, Cin = x.shape
    H, _, Cout = w_heads.shape
    Cemb = emb.shape[1]

    # Lane-dense output channels (pad to a multiple of 128, slice back at the end).
    Cp = ((Cout + 127) // 128) * 128
    pad_c = Cp - Cout

    # --- parameter folding / padding (pure parameter transforms) -------------
    w_pad = jnp.pad(w_heads, ((0, 0), (0, 0), (0, pad_c)))            # (H, Cin, Cp)
    w_all = jnp.transpose(w_pad, (1, 0, 2)).reshape(Cin, H * Cp).astype(jnp.bfloat16)

    bias_p = jnp.pad(bias, ((0, 0), (0, pad_c)))
    gamma_p = jnp.pad(gamma, ((0, 0), (0, pad_c)), constant_values=1.0)
    beta_p = jnp.pad(beta, ((0, 0), (0, pad_c)))

    ai_v, aj_v = att_i[:, 0, :], att_j[:, 0, :]                       # (H, Cout)
    aei_v, aej_v = att_em_i[:, 0, :], att_em_j[:, 0, :]               # (H, Cemb)
    wai = jnp.einsum('hio,ho->ih', w_heads, ai_v)                     # (Cin, H)
    waj = jnp.einsum('hio,ho->ih', w_heads, aj_v)                     # (Cin, H)
    w_att = jnp.concatenate(
        [jnp.concatenate([wai, aei_v.T], axis=0),                     # -> a_i columns
         jnp.concatenate([waj, aej_v.T], axis=0)], axis=1)            # -> a_j columns

    # --- one-time precompute, hoisted out of the row-tile grid ---------------
    xh_all = jnp.dot(x.astype(jnp.bfloat16), w_all,
                     preferred_element_type=jnp.float32).astype(jnp.bfloat16)   # (N, H*Cp)
    xe = jnp.concatenate([x, emb], axis=1)                            # (N, Cin+Cemb)
    a_pair = jnp.dot(xe, w_att)                                       # (N, 2H) f32
    a_i_all = a_pair[:, :H]                                           # (N, H)
    a_jT = a_pair[:, H:].T                                            # (H, N)

    adj_i8 = (adj != 0).astype(jnp.int8)                              # O(N^2) input in int8

    # --- tiling ---------------------------------------------------------------
    vmem_limit = _vmem_limit_bytes()
    if row_tile is None:
        row_tile = _pick_row_tile(N, H, Cp, vmem_limit)
    assert N % row_tile == 0
    ntiles = N // row_tile
    grid = (ntiles,)

    def full(shape):
        return pl.BlockSpec(shape, lambda i, _n=len(shape): (0,) * _n)

    # TODO(synk): mark xh_all / a_jT / bias_p with pipeline_mode=pl.Buffered(1)
    # (single-buffered grid-invariant inputs) once supported by the installed
    # Pallas version.
    attn_grid = pltpu.PrefetchScalarGridSpec(
        num_scalar_prefetch=0,
        grid=grid,
        in_specs=[
            pl.BlockSpec((row_tile, N), lambda i: (i, 0)),    # adjacency row tile (int8)
            pl.BlockSpec((row_tile, H), lambda i: (i, 0)),    # a_i rows
            full((H, N)),                                     # a_j (all sources)
            full((N, H * Cp)),                                # xh_all (bf16)
            full((1, Cp)),                                    # bias
        ],
        out_specs=[
            pl.BlockSpec((row_tile, Cp), lambda i: (i, 0)),   # pre-activation
            pl.BlockSpec((1, 2, Cp), lambda i: (i, 0, 0)),    # per-tile [sum; sumsq]
        ],
    )

    pre, stats = pl.pallas_call(
        gnn_attn_kernel,
        out_shape=(jax.ShapeDtypeStruct((N, Cp), jnp.float32),
                   jax.ShapeDtypeStruct((ntiles, 2, Cp), jnp.float32)),
        grid_spec=attn_grid,
        compiler_params=pltpu.CompilerParams(
            dimension_semantics=("parallel",),
            vmem_limit_bytes=vmem_limit),
    )(adj_i8, a_i_all, a_jT, xh_all, bias_p)

    # --- finalize BatchNorm statistics (tiny (ntiles, Cp) reduction) ----------
    inv_n = 1.0 / N
    mean = jnp.sum(stats[:, 0, :], axis=0, keepdims=True) * inv_n     # (1, Cp)
    ex2 = jnp.sum(stats[:, 1, :], axis=0, keepdims=True) * inv_n
    var = jnp.maximum(ex2 - mean * mean, 0.0)                         # biased variance
    scale = gamma_p * lax.rsqrt(var + 1e-5)
    shift = beta_p - mean * scale

    # --- normalize + ReLU, row-tiled & pipelined -------------------------------
    out_p = pl.pallas_call(
        bn_relu_kernel,
        out_shape=jax.ShapeDtypeStruct((N, Cp), jnp.float32),
        grid_spec=pltpu.PrefetchScalarGridSpec(
            num_scalar_prefetch=0,
            grid=grid,
            in_specs=[pl.BlockSpec((row_tile, Cp), lambda i: (i, 0)),
                      full((1, Cp)), full((1, Cp))],
            out_specs=pl.BlockSpec((row_tile, Cp), lambda i: (i, 0))),
        compiler_params=pltpu.CompilerParams(
            dimension_semantics=("parallel",),
            vmem_limit_bytes=vmem_limit),
    )(pre, scale, shift)

    return out_p[:, :Cout]


def build_adjacency(edge_index, num_nodes):
    """Dense int8 adjacency after remove_self_loops + add_self_loops.
    adj[i, j] = 1 iff edge j -> i (edge_index[0]=source, edge_index[1]=target)."""
    src, tgt = edge_index[0], edge_index[1]
    adj = jnp.zeros((num_nodes, num_nodes), jnp.int8)
    adj = adj.at[tgt, src].set(1)
    idx = jnp.arange(num_nodes)
    adj = adj.at[idx, idx].set(1)
    return adj


def ref_forward(x, adj, emb, w_heads, att_i, att_j, att_em_i, att_em_j,
                bias, gamma, beta):
    """Pure-JAX reference with the same math; the attention-weighted matmuls use
    the kernel's intentional bf16-operand / f32-accumulate precision (softmax
    normalization here is exact division, in f32)."""
    H = w_heads.shape[0]
    mask = adj != 0
    acc = 0.0
    for h in range(H):
        xh_f32 = x @ w_heads[h]                                        # logits path (f32)
        xh_msg = jnp.dot(x.astype(jnp.bfloat16),
                         w_heads[h].astype(jnp.bfloat16),
                         preferred_element_type=jnp.float32)           # message path (bf16)
        a_i = (xh_f32 * att_i[h]).sum(1, keepdims=True) + (emb * att_em_i[h]).sum(1, keepdims=True)
        a_j = (xh_f32 * att_j[h]).sum(1, keepdims=True) + (emb * att_em_j[h]).sum(1, keepdims=True)
        logits = a_i + a_j.T
        logits = jnp.where(logits > 0, logits, 0.2 * logits)
        logits = jnp.where(mask, logits, -1e30)
        p = jnp.exp(logits - logits.max(1, keepdims=True))
        p = jnp.where(mask, p, 0.0)
        unnorm = jnp.dot(p.astype(jnp.bfloat16), xh_msg.astype(jnp.bfloat16),
                         preferred_element_type=jnp.float32)
        acc = acc + unnorm / p.sum(1, keepdims=True)
    out = acc / H + bias
    mean = out.mean(0, keepdims=True)
    var = ((out - mean) ** 2).mean(0, keepdims=True)
    y = (out - mean) / jnp.sqrt(var + 1e-5) * gamma + beta
    return jnp.maximum(y, 0.0)


if __name__ == "__main__":
    N, Cin, Cout, H, E = 16, 8, 32, 2, 48   # nodes, in_channel, out_channel, heads, edges

    key = jax.random.PRNGKey(0)
    ks = jax.random.split(key, 10)

    # inputs
    x = jax.random.normal(ks[0], (N, Cin), jnp.float32)
    emb = jax.random.normal(ks[1], (N, Cout), jnp.float32)     # node embeddings (dim == Cout)
    src = jax.random.randint(ks[2], (E,), 0, N, dtype=jnp.int32)
    tgt = jax.random.randint(ks[3], (E,), 0, N, dtype=jnp.int32)
    edge_index = jnp.stack([src, tgt])                          # [2, E]
    adj = build_adjacency(edge_index, N)                        # int8, self-loops included

    # deterministic parameter init (shapes from GraphLayer.__init__)
    scale = 1.0 / math.sqrt(Cin)
    w = jax.random.normal(ks[4], (Cin, H * Cout), jnp.float32) * scale
    w_heads = w.reshape(Cin, H, Cout).transpose(1, 0, 2)                 # [H, Cin, Cout]
    att_i = jax.random.normal(ks[5], (H, 1, Cout), jnp.float32) * 0.1
    att_j = jax.random.normal(ks[6], (H, 1, Cout), jnp.float32) * 0.1
    att_em_i = jax.random.normal(ks[7], (H, 1, Cout), jnp.float32) * 0.1
    att_em_j = jax.random.normal(ks[8], (H, 1, Cout), jnp.float32) * 0.1
    bias = jax.random.normal(ks[9], (1, Cout), jnp.float32) * 0.1        # concat=False -> (Cout,)
    gamma = jnp.ones((1, Cout), jnp.float32)                             # BatchNorm1d defaults
    beta = jnp.zeros((1, Cout), jnp.float32)

    out = gnn_layer_forward(x, adj, emb, w_heads, att_i, att_j,
                            att_em_i, att_em_j, bias, gamma, beta)
    jax.block_until_ready(out)

    ref = ref_forward(x, adj, emb, w_heads, att_i, att_j, att_em_i, att_em_j,
                      bias, gamma, beta)
    assert out.shape == (N, Cout)
    assert jnp.allclose(out, ref, rtol=1e-2, atol=1e-2), "kernel/reference mismatch"

    print("KERNEL_OK")
</pallas_src>

<mosaic_0001>
module attributes {stable_mosaic.version = 11 : i64} {
  func.func @gnn_attn_kernel(%arg0: i32, %arg1: memref<16x16xi8, #tpu.memory_space<vmem>>, %arg2: memref<16x2xf32, #tpu.memory_space<vmem>>, %arg3: memref<2x16xf32, #tpu.memory_space<vmem>>, %arg4: memref<16x256xbf16, #tpu.memory_space<vmem>>, %arg5: memref<1x128xf32, #tpu.memory_space<vmem>>, %arg6: memref<16x128xf32, #tpu.memory_space<vmem>>, %arg7: memref<1x2x128xf32, #tpu.memory_space<vmem>>) attributes {dimension_semantics = [#tpu.dimension_semantics<parallel>], iteration_bounds = array<i64: 1>, scalar_prefetch = 0 : i64, scratch_operands = 0 : i64, tpu.core_type = #tpu.core_type<tc>, window_params = [{transform_indices = @transform_0, window_bounds = array<i64: 16, 16>}, {transform_indices = @transform_1, window_bounds = array<i64: 16, 2>}, {pipeline_mode = #tpu.pipeline_mode<synchronous>, transform_indices = @transform_2, window_bounds = array<i64: 2, 16>}, {pipeline_mode = #tpu.pipeline_mode<synchronous>, transform_indices = @transform_3, window_bounds = array<i64: 16, 256>}, {pipeline_mode = #tpu.pipeline_mode<synchronous>, transform_indices = @transform_4, window_bounds = array<i64: 1, 128>}, {transform_indices = @transform_5, window_bounds = array<i64: 16, 128>}, {transform_indices = @transform_6, window_bounds = array<i64: 1, 2, 128>}]} {
    %c0 = arith.constant 0 : index
    %c0_0 = arith.constant 0 : index
    %0 = vector.load %arg1[%c0, %c0_0] : memref<16x16xi8, #tpu.memory_space<vmem>>, vector<16x16xi8>
    %c0_i8 = arith.constant 0 : i8
    %1 = vector.broadcast %c0_i8 : i8 to vector<16x16xi8>
    %2 = arith.cmpi ne, %0, %1 : vector<16x16xi8>
    %c0_1 = arith.constant 0 : index
    %c0_2 = arith.constant 0 : index
    %3 = vector.load %arg2[%c0_1, %c0_2] : memref<16x2xf32, #tpu.memory_space<vmem>>, vector<16x2xf32>
    %c0_3 = arith.constant 0 : index
    %c0_4 = arith.constant 0 : index
    %4 = vector.load %arg3[%c0_3, %c0_4] : memref<2x16xf32, #tpu.memory_space<vmem>>, vector<2x16xf32>
    %cst = arith.constant 0.000000e+00 : f32
    %5 = vector.broadcast %cst : f32 to vector<16x128xf32>
    %6 = vector.extract_strided_slice %3 {offsets = [0, 0], sizes = [16, 1], strides = [1, 1]} : vector<16x2xf32> to vector<16x1xf32>
    %7 = vector.extract_strided_slice %4 {offsets = [0, 0], sizes = [1, 16], strides = [1, 1]} : vector<2x16xf32> to vector<1x16xf32>
    %8 = vector.broadcast %6 : vector<16x1xf32> to vector<16x16xf32>
    %9 = vector.broadcast %7 : vector<1x16xf32> to vector<16x16xf32>
    %10 = arith.addf %8, %9 : vector<16x16xf32>
    %cst_5 = arith.constant 0.000000e+00 : f32
    %11 = vector.broadcast %cst_5 : f32 to vector<16x16xf32>
    %12 = arith.cmpf ogt, %10, %11 : vector<16x16xf32>
    %cst_6 = arith.constant 2.000000e-01 : f32
    %13 = vector.broadcast %cst_6 : f32 to vector<16x16xf32>
    %14 = arith.mulf %13, %10 : vector<16x16xf32>
    %15 = arith.select %12, %10, %14 : vector<16x16xi1>, vector<16x16xf32>
    %cst_7 = arith.constant -1.000000e+30 : f32
    %16 = vector.broadcast %cst_7 : f32 to vector<16x16xf32>
    %17 = arith.select %2, %15, %16 : vector<16x16xi1>, vector<16x16xf32>
    %cst_8 = arith.constant dense<0xFF800000> : vector<16xf32>
    %18 = vector.multi_reduction <maximumf>, %17, %cst_8 [1] : vector<16x16xf32> to vector<16xf32>
    %19 = vector.shape_cast %18 : vector<16xf32> to vector<16x1xf32>
    %20 = vector.broadcast %19 : vector<16x1xf32> to vector<16x16xf32>
    %21 = arith.subf %17, %20 : vector<16x16xf32>
    %22 = math.exp %21 : vector<16x16xf32>
    %cst_9 = arith.constant dense<0.000000e+00> : vector<16xf32>
    %23 = vector.multi_reduction <add>, %22, %cst_9 [1] : vector<16x16xf32> to vector<16xf32>
    %24 = vector.shape_cast %23 : vector<16xf32> to vector<16x1xf32>
    %cst_10 = arith.constant 1.000000e-30 : f32
    %25 = vector.broadcast %cst_10 : f32 to vector<16x1xf32>
    %26 = arith.maximumf %24, %25 : vector<16x1xf32>
    %27 = arith.truncf %22 : vector<16x16xf32> to vector<16x16xbf16>
    %c0_11 = arith.constant 0 : index
    %c0_12 = arith.constant 0 : index
    %28 = vector.load %arg4[%c0_11, %c0_12] : memref<16x256xbf16, #tpu.memory_space<vmem>>, vector<16x128xbf16>
    %cst_13 = arith.constant dense<0.000000e+00> : vector<16x128xf32>
    %29 = tpu.matmul %27, %28, %cst_13 {dimension_numbers = #tpu.dot_dimension_numbers<[1], [0], [0], [1], [0, 0, 1, 1], [], []>} : vector<16x16xbf16>, vector<16x128xbf16>, vector<16x128xf32> -> vector<16x128xf32>
    %30 = tpu.reciprocal %26 {approx = true} : vector<16x1xf32> -> vector<16x1xf32>
    %31 = vector.broadcast %30 : vector<16x1xf32> to vector<16x128xf32>
    %32 = arith.mulf %29, %31 : vector<16x128xf32>
    %33 = arith.addf %5, %32 : vector<16x128xf32>
    %34 = vector.extract_strided_slice %3 {offsets = [0, 1], sizes = [16, 1], strides = [1, 1]} : vector<16x2xf32> to vector<16x1xf32>
    %35 = vector.extract_strided_slice %4 {offsets = [1, 0], sizes = [1, 16], strides = [1, 1]} : vector<2x16xf32> to vector<1x16xf32>
    %36 = vector.broadcast %34 : vector<16x1xf32> to vector<16x16xf32>
    %37 = vector.broadcast %35 : vector<1x16xf32> to vector<16x16xf32>
    %38 = arith.addf %36, %37 : vector<16x16xf32>
    %cst_14 = arith.constant 0.000000e+00 : f32
    %39 = vector.broadcast %cst_14 : f32 to vector<16x16xf32>
    %40 = arith.cmpf ogt, %38, %39 : vector<16x16xf32>
    %cst_15 = arith.constant 2.000000e-01 : f32
    %41 = vector.broadcast %cst_15 : f32 to vector<16x16xf32>
    %42 = arith.mulf %41, %38 : vector<16x16xf32>
    %43 = arith.select %40, %38, %42 : vector<16x16xi1>, vector<16x16xf32>
    %cst_16 = arith.constant -1.000000e+30 : f32
    %44 = vector.broadcast %cst_16 : f32 to vector<16x16xf32>
    %45 = arith.select %2, %43, %44 : vector<16x16xi1>, vector<16x16xf32>
    %cst_17 = arith.constant dense<0xFF800000> : vector<16xf32>
    %46 = vector.multi_reduction <maximumf>, %45, %cst_17 [1] : vector<16x16xf32> to vector<16xf32>
    %47 = vector.shape_cast %46 : vector<16xf32> to vector<16x1xf32>
    %48 = vector.broadcast %47 : vector<16x1xf32> to vector<16x16xf32>
    %49 = arith.subf %45, %48 : vector<16x16xf32>
    %50 = math.exp %49 : vector<16x16xf32>
    %cst_18 = arith.constant dense<0.000000e+00> : vector<16xf32>
    %51 = vector.multi_reduction <add>, %50, %cst_18 [1] : vector<16x16xf32> to vector<16xf32>
    %52 = vector.shape_cast %51 : vector<16xf32> to vector<16x1xf32>
    %cst_19 = arith.constant 1.000000e-30 : f32
    %53 = vector.broadcast %cst_19 : f32 to vector<16x1xf32>
    %54 = arith.maximumf %52, %53 : vector<16x1xf32>
    %55 = arith.truncf %50 : vector<16x16xf32> to vector<16x16xbf16>
    %c0_20 = arith.constant 0 : index
    %c128 = arith.constant 128 : index
    %56 = vector.load %arg4[%c0_20, %c128] : memref<16x256xbf16, #tpu.memory_space<vmem>>, vector<16x128xbf16>
    %cst_21 = arith.constant dense<0.000000e+00> : vector<16x128xf32>
    %57 = tpu.matmul %55, %56, %cst_21 {dimension_numbers = #tpu.dot_dimension_numbers<[1], [0], [0], [1], [0, 0, 1, 1], [], []>} : vector<16x16xbf16>, vector<16x128xbf16>, vector<16x128xf32> -> vector<16x128xf32>
    %58 = tpu.reciprocal %54 {approx = true} : vector<16x1xf32> -> vector<16x1xf32>
    %59 = vector.broadcast %58 : vector<16x1xf32> to vector<16x128xf32>
    %60 = arith.mulf %57, %59 : vector<16x128xf32>
    %61 = arith.addf %33, %60 : vector<16x128xf32>
    %cst_22 = arith.constant 5.000000e-01 : f32
    %62 = vector.broadcast %cst_22 : f32 to vector<16x128xf32>
    %63 = arith.mulf %61, %62 : vector<16x128xf32>
    %c0_23 = arith.constant 0 : index
    %c0_24 = arith.constant 0 : index
    %64 = vector.load %arg5[%c0_23, %c0_24] : memref<1x128xf32, #tpu.memory_space<vmem>>, vector<1x128xf32>
    %65 = vector.broadcast %64 : vector<1x128xf32> to vector<16x128xf32>
    %66 = arith.addf %63, %65 : vector<16x128xf32>
    %c0_25 = arith.constant 0 : index
    %c0_26 = arith.constant 0 : index
    %67 = vector.load %arg6[%c0_25, %c0_26] : memref<16x128xf32, #tpu.memory_space<vmem>>, vector<16x128xf32>
    tpu.vector_store %arg6[%c0_25, %c0_26], %66 {strides = array<i32>} : memref<16x128xf32, #tpu.memory_space<vmem>>, vector<16x128xf32>,
    %cst_27 = arith.constant dense<0.000000e+00> : vector<128xf32>
    %68 = vector.multi_reduction <add>, %66, %cst_27 [0] : vector<16x128xf32> to vector<128xf32>
    %69 = vector.shape_cast %68 : vector<128xf32> to vector<1x128xf32>
    %70 = arith.mulf %66, %66 : vector<16x128xf32>
    %cst_28 = arith.constant dense<0.000000e+00> : vector<128xf32>
    %71 = vector.multi_reduction <add>, %70, %cst_28 [0] : vector<16x128xf32> to vector<128xf32>
    %72 = vector.shape_cast %71 : vector<128xf32> to vector<1x128xf32>
    %73 = tpu.concatenate %69, %72 in 0 : vector<1x128xf32>, vector<1x128xf32> -> vector<2x128xf32>
    %74 = vector.shape_cast %73 : vector<2x128xf32> to vector<1x2x128xf32>
    %c0_29 = arith.constant 0 : index
    %c0_30 = arith.constant 0 : index
    %c0_31 = arith.constant 0 : index
    %75 = vector.load %arg7[%c0_29, %c0_30, %c0_31] : memref<1x2x128xf32, #tpu.memory_space<vmem>>, vector<1x2x128xf32>
    tpu.vector_store %arg7[%c0_29, %c0_30, %c0_31], %74 {strides = array<i32>} : memref<1x2x128xf32, #tpu.memory_space<vmem>>, vector<1x2x128xf32>,
    return
  }
  func.func @transform_0(%arg0: i32) -> (i32, i32) {
    %c0_i32 = arith.constant 0 : i32
    %c0_i32_0 = arith.constant 0 : i32
    return %arg0, %c0_i32 : i32, i32
  }
  func.func @transform_1(%arg0: i32) -> (i32, i32) {
    %c0_i32 = arith.constant 0 : i32
    %c0_i32_0 = arith.constant 0 : i32
    return %arg0, %c0_i32 : i32, i32
  }
  func.func @transform_2(%arg0: i32) -> (i32, i32) {
    %c0_i32 = arith.constant 0 : i32
    %c0_i32_0 = arith.constant 0 : i32
    %c0_i32_1 = arith.constant 0 : i32
    return %c0_i32, %c0_i32_0 : i32, i32
  }
  func.func @transform_3(%arg0: i32) -> (i32, i32) {
    %c0_i32 = arith.constant 0 : i32
    %c0_i32_0 = arith.constant 0 : i32
    %c0_i32_1 = arith.constant 0 : i32
    return %c0_i32, %c0_i32_0 : i32, i32
  }
  func.func @transform_4(%arg0: i32) -> (i32, i32) {
    %c0_i32 = arith.constant 0 : i32
    %c0_i32_0 = arith.constant 0 : i32
    %c0_i32_1 = arith.constant 0 : i32
    return %c0_i32, %c0_i32_0 : i32, i32
  }
  func.func @transform_5(%arg0: i32) -> (i32, i32) {
    %c0_i32 = arith.constant 0 : i32
    %c0_i32_0 = arith.constant 0 : i32
    return %arg0, %c0_i32 : i32, i32
  }
  func.func @transform_6(%arg0: i32) -> (i32, i32, i32) {
    %c0_i32 = arith.constant 0 : i32
    %c0_i32_0 = arith.constant 0 : i32
    %c0_i32_1 = arith.constant 0 : i32
    return %arg0, %c0_i32, %c0_i32_0 : i32, i32, i32
  }
}

</mosaic_0001>

<bundles_post_ra>
// kernel: tpu_custom_call.1
= control target key start
LH: loop header
LB: loop body
LE: loop exit
PB: predicated region body
PF: predicated region fallthrough
CT: control target
= control target key end

     0   :  { %12 = vsyncpa [#allocation3], 0  ;;  %v401_v1 = vmov 1   ;;  %v402_v2 = vmov 0   ;;  %s492_s0 = inlined_call_operand.vmem [shape: s8[16,16], index: 0, kind: input, shape index: {}]   ;;  %s493_s1 = inlined_call_operand.vmem [shape: f32[16,2], index: 1, kind: input, shape index: {}]   ;;  %s494_s2 = inlined_call_operand.vmem [shape: f32[2,16], index: 2, kind: input, shape index: {}]   ;;  %s495_s3 = inlined_call_operand.vmem [shape: bf16[16,256], index: 3, kind: input, shape index: {}]   ;;  %s496_s4 = inlined_call_operand.vmem [shape: f32[1,128], index: 4, kind: input, shape index: {}]   ;;  %s497_s5 = inlined_call_operand.hbm [shape: f32[16,128], index: 5, kind: output, shape index: {0}]   ;;  %s498_s6 = inlined_call_operand.hbm [shape: f32[1,2,128], index: 6, kind: output, shape index: {1}]  }
   0x1   :  { %v31_v0 = vld [vmem:[%s493_s1] sm:$0xff]  ;;  %337 = vset.pattern.permute.xlu1 %v401_v1  ;;  %336 = vset.pattern.permute.xlu0 %v402_v2  ;;  %v32_v3 = vld [vmem:[%s493_s1 + $0x8] sm:$0xff] }
   0x2   :  { %145 = vperm.xlu1 %337, %v31_v0   ;;  %36 = vperm.xlu0 %336, %v31_v0  }
   0x3   :  { %13 = vsyncpa [#allocation5], 0  ;;  %v44_v4 = vlaneseq  ;;  %v27_v6 = vld [vmem:[%s492_s0] sm:$0x3]  ;;  %v28_v9 = vld [vmem:[%s492_s0 + $0x2] sm:$0x3] }
   0x4   :  { %vm29_vm0 = vnez %v27_v6  ;;  %v33_v10 = vld [vmem:[%s494_s2] sm:$0x3]  ;;  %vm30_vm1 = vnez %v28_v9  ;;  %vm64_vm5 = vcmask 130048   ;;  %v403_v43 = vmov 0.0   ;;  %v340_v44 = vld [vmem:[%s495_s3 + $0x4] ss:$8 sps:$4 sm:$0xff]  }
   0x5   :  { %v45_v5 = vshrl.u32 %v44_v4, 7  ;;  %v56_v11 = vsel %vm29_vm0, 16843009, %v402_v2  ;;  %v57_v15 = vsel %vm30_vm1, 16843009, %v402_v2  ;;  %316 = vmatprep.subr.bf16.mxu0 %v403_v43  ;;  %vm404_vm9 = vmmov 0   ;;  %322 = vmatprep.subr.bf16.mxu1 %v403_v43 }
   0x6   :  { %149 = vperm.xlu1 %337, %v32_v3   ;;  %41 = vperm.xlu0 %336, %v32_v3   ;;  %v58_v14 = vunpack.c.0.s8 %v56_v11  ;;  %v59_v21 = vunpack.c.0.s8 %v57_v15  ;;  %v339_v42 = vld [vmem:[%s495_s3] ss:$8 sps:$4 sm:$0xff]   ;;  %s405_s9 = smov [#allocation2]  }
   0x7   :  { %v154_v7 = vsub.s32 1, %v45_v5  ;;  %v46_v8 = vsub.s32 0, %v45_v5  ;;  %318 = vmatprep.mubr.msk.bf16.mxu0 %vm404_vm9, %v403_v43  ;;  %317 = vmatpush3.bf16.msra.mxu0 %v339_v42  ;;  %s282_s10 = sshll.u32 %s405_s9, 4  ;;  %s283_s10 = int_to_ptr.vmem [resolvable:$true] %s282_s10 }
   0x8   :  { %vm459_vm2 = vcmp.ne.s32.totalorder %v58_v14, 0  ;;  %vm61_vm6 = vcmp.ne.s32.totalorder %v59_v21, 0  ;;  %324 = vmatprep.mubr.msk.bf16.mxu1 %vm404_vm9, %v403_v43  ;;  %323 = vmatpush3.bf16.msra.mxu1 %v340_v44  ;;  %s357_s11 = scalar_lea.vmem %s283_s10, 256  ;;  %p362_p1 = scmp.lt.s32.totalorder %s283_s10, %s283_s10 }
   0x9   :  { %v155_v12 = vrot.slane %v33_v10, %v154_v7  ;;  %v47_v13 = vrot.slane %v33_v10, %v46_v8  ;;  %p358_p0 = scmp.ne.s32.totalorder %s283_s10, %s357_s11  ;;  %p363_p2 = scmp.lt.s32.totalorder %s357_s11, %s357_s11 }
   0xa   :  { %338 = vset.pattern.permute.xlu0 %v401_v1 }
   0xb   :  { %p364_p3 = por %p363_p2, %p362_p1 }
   0xd   :  { %p365_p4 = pnand %p364_p3, %p358_p0 }
  0x7d   :  { %v146_v16 = vpop.permute.xlu1 %145  ;;  %v37_v17 = vpop.permute.xlu0 %36 }
  0x7e   :  { %v156_v18 = vadd.f32 %v155_v12, %v146_v16  ;;  %v48_v19 = vadd.f32 %v47_v13, %v37_v17 }
  0x80   :  { %v160_v22 = vmul.f32 0.2, %v156_v18  ;;  %v52_v23 = vmul.f32 0.2, %v48_v19  ;;  %vm50_vm3 = vcmp.gt.f32.partialorder %v48_v19, 0.0  ;;  %vm158_vm4 = vcmp.gt.f32.partialorder %v156_v18, 0.0 }
  0x81   :  { %v150_v24 = vpop.permute.xlu1 %149  ;;  %v42_v25 = vpop.permute.xlu0 %41 }
  0x82   :  { %v157_v26 = vadd.f32 %v155_v12, %v150_v24  ;;  %v49_v27 = vadd.f32 %v47_v13, %v42_v25  ;;  %v54_v28 = vsel %vm50_vm3, %v48_v19, %v52_v23  ;;  %v162_v29 = vsel %vm158_vm4, %v156_v18, %v160_v22  ;;  %v311_v24 = vld [vmem:[%s496_s4] ss:$0 sm:$0xff] }
  0x83   :  { %v62_v30 = vsel %vm459_vm2, %v54_v28, -1e+30  ;;  %v164_v34 = vsel %vm459_vm2, %v162_v29, -1e+30 }
  0x84   :  { %v161_v31 = vmul.f32 0.2, %v157_v26  ;;  %v53_v32 = vmul.f32 0.2, %v49_v27  ;;  %v65_v33 = vsel %vm64_vm5, %v62_v30, -inf  ;;  %vm51_vm7 = vcmp.gt.f32.partialorder %v49_v27, 0.0 }
  0x85   :  { %66 = vmax.xlane.f32.xlu0 %v65_v33  ;;  %vm159_vm8 = vcmp.gt.f32.partialorder %v157_v26, 0.0  ;;  %v166_v39 = vsel %vm64_vm5, %v164_v34, -inf }
  0x86   :  { %v55_v35 = vsel %vm51_vm7, %v49_v27, %v53_v32  ;;  %v163_v36 = vsel %vm159_vm8, %v157_v26, %v161_v31 }
  0x87   :  { %v63_v37 = vsel %vm61_vm6, %v55_v35, -1e+30  ;;  %v165_v40 = vsel %vm61_vm6, %v163_v36, -1e+30 }
  0x88   :  { %v68_v38 = vsel %vm64_vm5, %v63_v37, -inf  ;;  %v169_v41 = vsel %vm64_vm5, %v165_v40, -inf }
  0x89   :  { %69 = vmax.xlane.f32.xlu1 %v68_v38  ;;  %167 = vmax.xlane.f32.xlu0 %v166_v39 }
  0x8d   :  { %170 = vmax.xlane.f32.xlu0 %v169_v41 }
 0x10e   :  { %v67_v45 = vpop.xlane.xlu0 %66 }
 0x10f   :  { %v71_v46 = vsub.f32 %v62_v30, %v67_v45 }
 0x111   :  { %v73_v47 = vmul.f32 1.442695, %v71_v46 }
 0x112   :  { %v70_v48 = vpop.xlane.xlu1 %69  ;;  %v168_v49 = vpop.xlane.xlu0 %167 }
 0x113   :  { %341 = vpow2.f32 %v73_v47  ;;  %v72_v50 = vsub.f32 %v63_v37, %v70_v48  ;;  %v172_v51 = vsub.f32 %v164_v34, %v168_v49 }
 0x115   :  { %v75_v52 = vmul.f32 1.442695, %v72_v50  ;;  %v174_v53 = vmul.f32 1.442695, %v172_v51 }
 0x116   :  { %v171_v54 = vpop.xlane.xlu0 %170 }
 0x117   :  { %343 = vpow2.f32 %v75_v52  ;;  %v173_v55 = vsub.f32 %v165_v40, %v171_v54 }
 0x118   :  { %345 = vpow2.f32 %v174_v53 }
 0x119   :  { %v176_v56 = vmul.f32 1.442695, %v173_v55 }
 0x11b   :  { %347 = vpow2.f32 %v176_v56 }
 0x120   :  { %v342_v57 = vpop.eup %341 }
 0x121   :  { %v77_v58 = vsel %vm64_vm5, %v342_v57, 0.0 }
 0x122   :  { %78 = vadd.xlane.f32.xlu1 %v77_v58 }
 0x124   :  { %v344_v59 = vpop.eup %343 }
 0x125   :  { %v346_v60 = vpop.eup %345  ;;  %v80_v61 = vsel %vm64_vm5, %v344_v59, 0.0  ;;  %v85_v62 = vpack.c.bf16 %v344_v59, %v342_v57 }
 0x126   :  { %81 = vadd.xlane.f32.xlu0 %v80_v61  ;;  %v178_v63 = vsel %vm64_vm5, %v346_v60, 0.0 }
 0x127   :  { %179 = vadd.xlane.f32.xlu1 %v178_v63  ;;  %319 = vmatmul.mubr.msk.bf16.vlgmr.msra.gmra.mxu0 %vm64_vm5, %v85_v62 }
 0x128   :  { %v348_v0 = vpop.eup %347 }
 0x129   :  { %v181_v1 = vsel %vm64_vm5, %v348_v0, 0.0  ;;  %v186_v2 = vpack.c.bf16 %v348_v0, %v346_v60 }
 0x12a   :  { %182 = vadd.xlane.f32.xlu0 %v181_v1 }
 0x12b   :  { %325 = vmatmul.mubr.msk.bf16.vlgmr.msra.gmra.mxu1 %vm64_vm5, %v186_v2 }
 0x1ab   :  { %v79_v3 = vpop.xlane.xlu1 %78 }
 0x1ac   :  { %v83_v6 = vmax.f32 %v79_v3, 1e-30 }
 0x1ae   :  { %349 = vrcp.f32 %v83_v6 }
 0x1af   :  { %v82_v4 = vpop.xlane.xlu0 %81 }
 0x1b0   :  { %v180_v5 = vpop.xlane.xlu1 %179  ;;  %v84_v9 = vmax.f32 %v82_v4, 1e-30 }
 0x1b1   :  { %v184_v7 = vmax.f32 %v180_v5, 1e-30 }
 0x1b3   :  { %v183_v8 = vpop.xlane.xlu0 %182  ;;  %351 = vrcp.f32 %v184_v7 }
 0x1b4   :  { %v185_v10 = vmax.f32 %v183_v8, 1e-30  ;;  %353 = vrcp.f32 %v84_v9 }
 0x1b6   :  { %355 = vrcp.f32 %v185_v10 }
 0x1bb   :  { %v350_v13 = vpop.eup %349 }
 0x1c0   :  { %v352_v14 = vpop.eup %351 }
 0x1c1   :  { %v354_v21 = vpop.eup %353 }
 0x1c3   :  { %v356_v23 = vpop.eup %355 }
 0x1e7   :  { %v131_v11 = vpop.f32.mrf.mxu0 }
 0x1e8   :  { %v140_v17 = vmul.f32 %v350_v13, %v131_v11 }
 0x1e9   :  { %v320_v12 = vpop.f32.mrf.mxu0 }
 0x1eb   :  { %v134_v15 = vpop.f32.mrf.mxu0  ;;  %v232_v16 = vpop.f32.mrf.mxu1 }
 0x1ec   :  { %v241_v18 = vmul.f32 %v352_v14, %v232_v16  ;;  %v141_v26 = vmul.f32 %v354_v21, %v134_v15 }
 0x1ed   :  { %v321_v19 = vpop.f32.mrf.mxu0  ;;  %v326_v20 = vpop.f32.mrf.mxu1 }
 0x1ee   :  { %v243_v22 = vadd.f32 %v241_v18, %v140_v17 }
 0x1ef   :  { %v235_v25 = vpop.f32.mrf.mxu1 }
 0x1f0   :  { %v245_v27 = vmul.f32 0.5, %v243_v22  ;;  %v242_v28 = vmul.f32 %v356_v23, %v235_v25 }
 0x1f1   :  { %v327_v29 = vpop.f32.mrf.mxu1 }
 0x1f2   :  { %v254_v30 = vadd.f32 %v311_v24, %v245_v27  ;;  %v244_v31 = vadd.f32 %v242_v28, %v141_v26 }
 0x1f4   :  { %256 = vst [vmem:[#allocation2] sm:$0xff] %v254_v30  ;;  %v246_v32 = vmul.f32 0.5, %v244_v31  ;;  %v265_v34 = vmul.f32 %v254_v30, %v254_v30 }
 0x1f6   :  { %v255_v33 = vadd.f32 %v311_v24, %v246_v32 }
 0x1f8   :  { %v258_v35 = vadd.f32 %v255_v33, %v254_v30  ;;  %v266_v36 = vmul.f32 %v255_v33, %v255_v33  ;;  %257 = vst [vmem:[#allocation2 + $0x8] sm:$0xff] %v255_v33 }
 0x1f9   :  { %368 = shalt.err (!%p365_p4)
}
 0x1fa   :  { %s406_s4 = smov 128   ;;  %s407_s12 = smov 8   ;;  %v259_v37 = vrot.slane %v258_v35, 4  ;;  %v267_v38 = vadd.f32 %v266_v36, %v265_v34  ;;  %vm274_vm10 = vcmask 1040384  }
 0x1fb   :  { %288 = dma.vmem_to_hbm [thread:$0]  %s283_s10, 256, %s497_s5, [#allocation3], %s406_s4, %s406_s4, %s407_s12  }
 0x1fc   :  { %v260_v39 = vadd.f32 %v259_v37, %v258_v35  ;;  %v268_v40 = vrot.slane %v267_v38, 4  ;;  %s408_s15 = smov [#allocation4]  }
 0x1fd   :  { %s295_s16 = sshll.u32 %s408_s15, 4  ;;  %s296_s16 = int_to_ptr.vmem [resolvable:$true] %s295_s16 }
 0x1fe   :  { %v261_v41 = vrot.slane %v260_v39, 2  ;;  %v269_v42 = vadd.f32 %v268_v40, %v267_v38  ;;  %s377_s5 = scalar_lea.vmem %s296_s16, 32  ;;  %p382_p6 = scmp.lt.s32.totalorder %s296_s16, %s296_s16 }
 0x1ff   :  { %p378_p5 = scmp.ne.s32.totalorder %s296_s16, %s377_s5  ;;  %p383_p7 = scmp.lt.s32.totalorder %s377_s5, %s377_s5 }
 0x200   :  { %v262_v43 = vadd.f32 %v261_v41, %v260_v39  ;;  %v270_v44 = vrot.slane %v269_v42, 2 }
 0x201   :  { %p384_p8 = por %p383_p7, %p382_p6 }
 0x202   :  { %v263_v45 = vrot.slane %v262_v43, 1  ;;  %v271_v46 = vadd.f32 %v270_v44, %v269_v42 }
 0x203   :  { %p385_p9 = pnand %p384_p8, %p378_p5 }
 0x204   :  { %v272_v47 = vrot.slane %v271_v46, 1  ;;  %v264_v48 = vadd.f32 %v263_v45, %v262_v43 }
 0x206   :  { %v273_v49 = vadd.f32 %v272_v47, %v271_v46 }
 0x208   :  { %v275_v50 = vsel %vm274_vm10, %v264_v48, %v273_v49 }
 0x209   :  { %276 = vst [vmem:[#allocation4] sm:$0x3] %v275_v50 }
 0x20a   :  { %388 = shalt.err (!%p385_p9)
}
 0x20b   :  { %298 = dma.vmem_to_hbm [thread:$0]  %s296_s16, 32, %s498_s6, [#allocation5]  }
 0x20c   :  { %397 = dma.done.wait [#allocation3], 256  }
 0x20d   :  { %398 = vsyncadd [#allocation3], 4294967040 }
 0x20e   :  { %399 = dma.done.wait [#allocation5], 32  }
 0x20f   :  { %400 = vsyncadd [#allocation5], 4294967264 }
 0x210   :  { %305 = vsyncpa [#allocation3], 1 }
 0x211   :  { %306 = vsyncpa [#allocation5], 1 }

</bundles_post_ra>
